<compile_context>
chip_gen: v7x
topology: tpu7x:2x2x1
jax: 0.10.0
libtpu: 0.0.40
codegen_flags: <defaults>
</compile_context>

<pallas_src>
import jax
import jax.numpy as jnp
from jax.experimental import pallas as pl
from jax.experimental.pallas import tpu as pltpu


def se_kernel(x_ref, w1t_ref, w2t_ref, o_ref):
    # x_ref: (TB, L, C) in native dtype (lane axis = C, dense).
    x = x_ref[...]

    # Squeeze: sum over L (second-to-last axis -> sublane reduce), accumulated
    # in f32. The 1/L of the mean is already folded into w1t.
    y = jnp.sum(x, axis=1, dtype=jnp.float32)                       # (TB, C)

    # Excite: tiny MLP on the pooled vector (f32 on the MXU).
    h = jnp.maximum(
        jnp.dot(y, w1t_ref[...], preferred_element_type=jnp.float32), 0.0)   # (TB, H)
    s = jax.nn.sigmoid(
        jnp.dot(h, w2t_ref[...], preferred_element_type=jnp.float32))        # (TB, C)

    # Scale: broadcast s over L (sublanes); keep the big multiply in x's dtype.
    o_ref[...] = (x * s[:, None, :].astype(x.dtype)).astype(o_ref.dtype)


def se_layer(x, w1, w2, *, max_batch_tile=256):
    """x: (B, C, L); w1: (H, C), w2: (C, H) in PyTorch Linear (out, in) convention."""
    B, C, L = x.shape
    H = w1.shape[0]

    # Channels-last so the lane axis is C (dense); plain layout plumbing.
    x_blc = jnp.transpose(x, (0, 2, 1))                              # (B, L, C)

    # Fold the mean's 1/L into the first weight (constant fold, outside kernel).
    w1t = (jnp.transpose(w1) / jnp.float32(L)).astype(jnp.float32)   # (C, H)
    w2t = jnp.transpose(w2).astype(jnp.float32)                      # (H, C)

    # Pick the batch tile: double-buffered (in + out) tiles must stay well under
    # the smallest default scoped-VMEM limit (v5e: 16 MiB) -> budget ~12 MiB.
    bytes_per_batch_row = L * C * x.dtype.itemsize
    budget = 12 * 1024 * 1024
    tb = max(1, min(B, max_batch_tile, budget // (4 * bytes_per_batch_row)))
    # Prefer >= 4 grid steps when the batch allows it, so the Pallas pipeline
    # can overlap DMA-in / compute / DMA-out across batch tiles.
    if B >= 4:
        tb = min(tb, max(1, B // 4))
    while B % tb != 0:   # keep tiles exact (no partial-tile masking needed)
        tb -= 1

    out_blc = pl.pallas_call(
        se_kernel,
        out_shape=jax.ShapeDtypeStruct((B, L, C), x.dtype),
        grid=(B // tb,),
        in_specs=[
            pl.BlockSpec((tb, L, C), lambda i: (i, 0, 0)),   # x tile
            pl.BlockSpec((C, H), lambda i: (0, 0)),          # w1t (resident)
            pl.BlockSpec((H, C), lambda i: (0, 0)),          # w2t (resident)
        ],
        out_specs=pl.BlockSpec((tb, L, C), lambda i: (i, 0, 0)),
        compiler_params=pltpu.CompilerParams(
            dimension_semantics=("parallel",)),               # 2 TCs on v7x
    )(x_blc, w1t, w2t)

    return jnp.transpose(out_blc, (0, 2, 1))                  # back to (B, C, L)


def se_layer_ref(x, w1, w2):
    """Pure-JAX reference matching the PyTorch module."""
    y = jnp.mean(x, axis=-1)                         # (B, C)
    h = jnp.maximum(y @ w1.T, 0.0)                   # (B, H)
    s = jax.nn.sigmoid(h @ w2.T)                     # (B, C)
    return x * s[:, :, None]


if __name__ == "__main__":
    # Small shapes consistent with SELayer(channel=64, reduction=16):
    B, C, L = 8, 64, 16
    reduction = 16
    H = C // reduction                               # 4

    key = jax.random.PRNGKey(0)
    kx, k1, k2 = jax.random.split(key, 3)

    x = jax.random.normal(kx, (B, C, L), dtype=jnp.float32)

    # Deterministic "PyTorch-like" Linear init: U(-1/sqrt(fan_in), 1/sqrt(fan_in))
    bound1 = 1.0 / jnp.sqrt(jnp.float32(C))
    bound2 = 1.0 / jnp.sqrt(jnp.float32(H))
    w1 = jax.random.uniform(k1, (H, C), jnp.float32, -bound1, bound1)  # Linear(C -> H), no bias
    w2 = jax.random.uniform(k2, (C, H), jnp.float32, -bound2, bound2)  # Linear(H -> C), no bias

    out = se_layer(x, w1, w2)
    out = jax.block_until_ready(out)

    ref = se_layer_ref(x, w1, w2)
    assert out.shape == (B, C, L)
    assert jnp.allclose(out, ref, atol=1e-5, rtol=1e-5), "mismatch vs reference"

    print("KERNEL_OK")
</pallas_src>

<mosaic_0001>
module attributes {stable_mosaic.version = 11 : i64} {
  func.func @se_kernel(%arg0: i32, %arg1: memref<2x16x64xf32, #tpu.memory_space<vmem>>, %arg2: memref<64x4xf32, #tpu.memory_space<vmem>>, %arg3: memref<4x64xf32, #tpu.memory_space<vmem>>, %arg4: memref<2x16x64xf32, #tpu.memory_space<vmem>>) attributes {dimension_semantics = [#tpu.dimension_semantics<parallel>], iteration_bounds = array<i64: 4>, scalar_prefetch = 0 : i64, scratch_operands = 0 : i64, tpu.core_type = #tpu.core_type<tc>, window_params = [{transform_indices = @transform_0, window_bounds = array<i64: 2, 16, 64>}, {pipeline_mode = #tpu.pipeline_mode<synchronous>, transform_indices = @transform_1, window_bounds = array<i64: 64, 4>}, {pipeline_mode = #tpu.pipeline_mode<synchronous>, transform_indices = @transform_2, window_bounds = array<i64: 4, 64>}, {transform_indices = @transform_3, window_bounds = array<i64: 2, 16, 64>}]} {
    %c0 = arith.constant 0 : index
    %c0_0 = arith.constant 0 : index
    %c0_1 = arith.constant 0 : index
    %0 = vector.load %arg1[%c0, %c0_0, %c0_1] : memref<2x16x64xf32, #tpu.memory_space<vmem>>, vector<2x16x64xf32>
    %cst = arith.constant dense<0.000000e+00> : vector<2x64xf32>
    %1 = vector.multi_reduction <add>, %0, %cst [1] : vector<2x16x64xf32> to vector<2x64xf32>
    %c0_2 = arith.constant 0 : index
    %c0_3 = arith.constant 0 : index
    %2 = vector.load %arg2[%c0_2, %c0_3] : memref<64x4xf32, #tpu.memory_space<vmem>>, vector<64x4xf32>
    %cst_4 = arith.constant dense<0.000000e+00> : vector<2x4xf32>
    %3 = tpu.matmul %1, %2, %cst_4 {dimension_numbers = #tpu.dot_dimension_numbers<[1], [0], [0], [1], [0, 0, 1, 1], [], []>} : vector<2x64xf32>, vector<64x4xf32>, vector<2x4xf32> -> vector<2x4xf32>
    %cst_5 = arith.constant 0.000000e+00 : f32
    %4 = vector.broadcast %cst_5 : f32 to vector<2x4xf32>
    %5 = arith.maximumf %3, %4 : vector<2x4xf32>
    %c0_6 = arith.constant 0 : index
    %c0_7 = arith.constant 0 : index
    %6 = vector.load %arg3[%c0_6, %c0_7] : memref<4x64xf32, #tpu.memory_space<vmem>>, vector<4x64xf32>
    %cst_8 = arith.constant dense<0.000000e+00> : vector<2x64xf32>
    %7 = tpu.matmul %5, %6, %cst_8 {dimension_numbers = #tpu.dot_dimension_numbers<[1], [0], [0], [1], [0, 0, 1, 1], [], []>} : vector<2x4xf32>, vector<4x64xf32>, vector<2x64xf32> -> vector<2x64xf32>
    %8 = arith.negf %7 : vector<2x64xf32>
    %9 = math.exp %8 : vector<2x64xf32>
    %cst_9 = arith.constant 1.000000e+00 : f32
    %10 = vector.broadcast %cst_9 : f32 to vector<2x64xf32>
    %11 = arith.addf %10, %9 : vector<2x64xf32>
    %12 = arith.divf %10, %11 : vector<2x64xf32>
    %13 = vector.shape_cast %12 : vector<2x64xf32> to vector<2x1x64xf32>
    %14 = vector.broadcast %13 : vector<2x1x64xf32> to vector<2x16x64xf32>
    %15 = arith.mulf %0, %14 : vector<2x16x64xf32>
    %c0_10 = arith.constant 0 : index
    %c0_11 = arith.constant 0 : index
    %c0_12 = arith.constant 0 : index
    %16 = vector.load %arg4[%c0_10, %c0_11, %c0_12] : memref<2x16x64xf32, #tpu.memory_space<vmem>>, vector<2x16x64xf32>
    tpu.vector_store %arg4[%c0_10, %c0_11, %c0_12], %15 {strides = array<i32>} : memref<2x16x64xf32, #tpu.memory_space<vmem>>, vector<2x16x64xf32>,
    return
  }
  func.func @transform_0(%arg0: i32) -> (i32, i32, i32) {
    %c0_i32 = arith.constant 0 : i32
    %c0_i32_0 = arith.constant 0 : i32
    %c0_i32_1 = arith.constant 0 : i32
    return %arg0, %c0_i32, %c0_i32_0 : i32, i32, i32
  }
  func.func @transform_1(%arg0: i32) -> (i32, i32) {
    %c0_i32 = arith.constant 0 : i32
    %c0_i32_0 = arith.constant 0 : i32
    %c0_i32_1 = arith.constant 0 : i32
    return %c0_i32, %c0_i32_0 : i32, i32
  }
  func.func @transform_2(%arg0: i32) -> (i32, i32) {
    %c0_i32 = arith.constant 0 : i32
    %c0_i32_0 = arith.constant 0 : i32
    %c0_i32_1 = arith.constant 0 : i32
    return %c0_i32, %c0_i32_0 : i32, i32
  }
  func.func @transform_3(%arg0: i32) -> (i32, i32, i32) {
    %c0_i32 = arith.constant 0 : i32
    %c0_i32_0 = arith.constant 0 : i32
    %c0_i32_1 = arith.constant 0 : i32
    return %arg0, %c0_i32, %c0_i32_0 : i32, i32, i32
  }
}

</mosaic_0001>

<bundles_post_ra>
// kernel: tpu_custom_call.1
= control target key start
LH: loop header
LB: loop body
LE: loop exit
PB: predicated region body
PF: predicated region fallthrough
CT: control target
= control target key end

     0   :  { %8 = vsyncpa [#allocation3], 0  ;;  %s987_s0 = inlined_call_operand.hbm [shape: f32[8,16,64], index: 0, kind: input, shape index: {}]   ;;  %s988_s1 = inlined_call_operand.vmem [shape: f32[64,4], index: 1, kind: input, shape index: {}]   ;;  %s989_s2 = inlined_call_operand.vmem [shape: f32[4,64], index: 2, kind: input, shape index: {}]   ;;  %s990_s3 = inlined_call_operand.hbm [shape: f32[8,16,64], index: 3, kind: output, shape index: {}]  }
   0x1   :  { %10 = vsyncpa [#allocation3 + $0x1], 0 }
   0x2   :  { %11 = vsyncpa [#allocation4], 0 }
   0x3   :  { %13 = vsyncpa [#allocation4 + $0x1], 0  ;;  %s771_s12 = smov 0   ;;  %s773_s13 = smov 0  }
   0x4   :  { %s775_s14 = smov 0   ;;  %s777_s15 = smov 0  }
   0x5 LB: > { %s792_s16 = sadd.s32 4294967295, %s739_s15   ;;  %s514_s17 = sadd.s32 4294967294, %s739_s15   ;;  %s739_s15 = sphi %s777_s15, %s1002_s15   ;;  %s735_s14 = sphi %s775_s14, %s1001_s14   ;;  %s731_s13 = sphi %s773_s13, %s1000_s13   ;;  %s727_s12 = sphi %s771_s12, %s999_s12  }
   0x6   : > { %s796_s18 = sadd.s32 1, %s739_s15   ;;  %s26_s19 = sadd.s32 1, %s735_s14 }
   0x7   : > { %s23_s20 = ssub.s32 %s739_s15, %s796_s18  ;;  %p33_p0 = scmp.ne.s32.totalorder %s735_s14, %s731_s13 }
   0x8   : > { %p24_p1 = scmp.eq.s32.totalorder %s23_s20, 0  ;;  %p34_p2 = scmp.eq.s32.totalorder %s739_s15, 0 }
   0x9   : > { %p39_p3 = scmp.ne.s32.totalorder %s731_s13, %s727_s12  ;;  %p40_p4 = scmp.eq.s32.totalorder %s792_s16, 0 }
   0xa   : > { %s808_s21 = scalar_select %p24_p1, %s735_s14, %s26_s19  }
   0xb   : > { %p810_p5 = por %p34_p2, %p33_p0  ;;  %p814_p6 = por %p40_p4, %p39_p3 }
   0xc   : > { %p105_p7 = scmp.eq.s32.totalorder %s792_s16, 3  ;;  %p111_p8 = scmp.eq.s32.totalorder %s514_s17, 3 }
   0xd   : > { %p597_p9 = scmp.lt.s32.totalorder %s739_s15, 4  ;;  %s137_s26 = sand.u32 1, %s735_s14  }
   0xe   : > { %p820_p10 = por %p105_p7, %p33_p0  ;;  %p824_p11 = por %p111_p8, %p39_p3 }
   0xf   : > { %s535_s27 = sshll.u32 %s739_s15, 9  ;;  %s517_s28 = sshll.u32 %s137_s26, 5 }
  0x10   : > { %s994_s24 = scalar_select %p820_p10, 1, 0 }
  0x11   : > { %s995_s25 = scalar_select %p824_p11, 1, 0 }
  0x12   : > { %s833_s4 = scalar_lea.hbm %s987_s0, %s535_s27  ;;  %s141_s5 = scalar_lea.vmem [#allocation2], %s517_s28 }
  0x13   : > { %s149_s6 = sshll.u32 %s141_s5, 4  ;;  %p837_p12 = pnand %p597_p9, %p810_p5  ;;  %s841_s6 = int_to_ptr.vmem [resolvable:$true] %s149_s6 }
  0x14   : > { %s843_s8 = scalar_lea.sflag [#allocation3], %s137_s26  ;;  %s643_s9 = scalar_lea.hbm %s833_s4, 512 }
  0x15   : > { %p644_p13 = scmp.ne.s32.totalorder %s833_s4, %s643_s9  ;;  %p645_p0 = pneg %p837_p12 }
  0x16   : > { %s648_s17 = scalar_lea.hbm %s987_s0, 2048  ;;  %p649_p3 = scmp.lt.u32.totalorder %s833_s4, %s987_s0 }
  0x17   : > { %p646_p1 = pnand %p645_p0, %p644_p13  ;;  %p650_p4 = scmp.lt.u32.totalorder %s648_s17, %s643_s9 }
  0x18   : > { %p652_p7 = scmp.lt.u32.totalorder %s643_s9, %s833_s4 }
  0x19   : > { %p647_p2 = pneg %p646_p1  ;;  %p651_p5 = por %p650_p4, %p649_p3 }
  0x1b   : > { %p653_p8 = por %p652_p7, %p651_p5 }
  0x1d   : > { %p654_p9 = pnand %p653_p8, %p647_p2 }
  0x1f   : > { %657 = shalt.err (!%p654_p9)
}
  0x20   : > { %s658_s22 = scalar_lea.vmem %s841_s6, 512  ;;  %s741_s26 = smov [#allocation2]  }
  0x21   : > { %p659_p13 = scmp.ne.s32.totalorder %s841_s6, %s658_s22  ;;  %s663_s27 = sshll.u32 %s741_s26, 4  ;;  %s664_s27 = int_to_ptr.vmem [resolvable:$false] %s663_s27 }
  0x22   : > { %s665_s28 = scalar_lea.vmem %s664_s27, 1024  ;;  %p666_p10 = scmp.lt.s32.totalorder %s841_s6, %s664_s27 }
  0x23   : > { %p661_p1 = pnand %p659_p13, %p645_p0  ;;  %p667_p3 = scmp.lt.s32.totalorder %s665_s28, %s658_s22 }
  0x25   : > { %p662_p11 = pneg %p661_p1  ;;  %p668_p4 = por %p667_p3, %p666_p10 }
  0x27   : > { %p669_p5 = pnand %p668_p4, %p662_p11 }
  0x29   : > { %672 = shalt.err (!%p669_p5)
}
  0x2a   : > { %s742_s29 = smov 128   ;;  %s743_s30 = smov 8  }
  0x2b   : > { %592 = dma.hbm_to_vmem [thread:$0]  (!%p837_p12), %s833_s4, 512, %s841_s6, %s843_s8, %s742_s29, %s742_s29, %s743_s30  }
  0x2c   : > { %p521_p0 = scmp.ge.s32.totalorder %s739_s15, 1  ;;  %p157_p2 = scmp.lt.s32.totalorder %s739_s15, 5 }
  0x2e   : > { %p158_p7 = pnand %p521_p0, %p157_p2 }
  0x2f   : > { %s874_s5 = sand.u32 (!%p158_p7), 1, %s731_s13  }
  0x30   : > { %161 = sbr.rel (%p158_p7) target bundleno = 552 (0x228), region = 32  ;;  %s522_s9 = sshll.u32 (!%p158_p7), %s874_s5, 5 }
  0x31   : > { %s164_s10 = scalar_lea.sflag (!%p158_p7), [#allocation3], %s874_s5  ;;  %s167_s11 = scalar_lea.vmem (!%p158_p7), [#allocation2], %s522_s9 }
  0x37   : > { %718 = dma.done.wait (%p814_p6), %s164_s10, 512  }
  0x38   : > { %720 = vsyncadd (%p814_p6), %s164_s10, 4294966784  ;;  %v744_v0 = vmov 0.0|0.0   ;;  %vm745_vm0 = vmmov 0   ;;  %v746_v1 = vmov 0.0   ;;  %v215_v2 = vld [vmem:[%s988_s1] sm:$0xff]  ;;  %v216_v3 = vld [vmem:[%s988_s1 + $0x8] sm:$0xff]  ;;  %v389_v48 = vlaneseq }
  0x39   : > { %573 = vmatprep.subr.bf16.mxu0 %v744_v0  ;;  %565 = vmatprep.mubr.msk.f32.mxu0 %vm745_vm0, %v746_v1  ;;  %v217_v4 = vld [vmem:[%s988_s1 + $0x10] sm:$0xff]  ;;  %vm196_vm1 = vcmask 523264   ;;  %v574_v5 = vpack.c.bf16 %v216_v3, %v215_v2  ;;  %v218_v6 = vld [vmem:[%s988_s1 + $0x18] sm:$0xff]  ;;  %v896_v7 = vld [vmem:[%s167_s11] sm:$0xff]  ;;  %vm225_vm2 = vcmask 1041409   ;;  %vm305_vm3 = vcmask 1043456  }
  0x3a   : > { %568 = vmatprep.subr.mxu1 %v746_v1  ;;  %570 = vmatprep.mubr.msk.f32.mxu1 %vm745_vm0, %v746_v1  ;;  %v577_v8 = vpack.c.bf16 %v218_v6, %v217_v4  ;;  %v898_v9 = vld [vmem:[%s167_s11 + $0x8] sm:$0xff]  ;;  %v900_v10 = vld [vmem:[%s167_s11 + $0x10] sm:$0xff]  ;;  %v902_v11 = vld [vmem:[%s167_s11 + $0x18] sm:$0xff]  ;;  %v197_v12 = vsel %vm196_vm1, %v896_v7, 0.0  ;;  %vm301_vm4 = vcmask 31744   ;;  %v390_v50 = vshrl.u32 %v389_v48, 7 }
  0x3b   : > { %575 = vmatpush3.bf16.msra.mxu0 %v574_v5  ;;  %v219_v13 = vld [vmem:[%s988_s1 + $0x20] sm:$0xff]  ;;  %v220_v14 = vld [vmem:[%s988_s1 + $0x28] sm:$0xff]  ;;  %v198_v15 = vsel %vm196_vm1, %v898_v9, 0.0  ;;  %v206_v16 = vsel %vm196_vm1, %v900_v10, 0.0  ;;  %v207_v17 = vsel %vm196_vm1, %v902_v11, 0.0  ;;  %v221_v23 = vld [vmem:[%s988_s1 + $0x30] sm:$0xff] }
  0x3c   : > { %576 = vmatprep.subr.bf16.mxu0 %v744_v0  ;;  %v199_v18 = vadd.f32 %v198_v15, %v197_v12  ;;  %v208_v19 = vadd.f32 %v207_v17, %v206_v16  ;;  %v580_v20 = vpack.c.bf16 %v220_v14, %v219_v13  ;;  %v222_v24 = vld [vmem:[%s988_s1 + $0x38] sm:$0xff]  ;;  %v300_v37 = vld [vmem:[%s989_s2] sm:$0xf]  ;;  %v747_v46 = vmov 1966171168   ;;  %s537_s7 = sshll.u32 %s792_s16, 9 }
  0x3d   : > { %v583_v27 = vpack.c.bf16 %v222_v24, %v221_v23  ;;  %569 = vmatpush3.msk.msra.mxu1 %vm305_vm3, %v300_v37  ;;  %v387_v47 = vunpack.c.l.s4 %v747_v46  ;;  %v410_v54 = vsub.s32 0, %v390_v50  ;;  %s189_s8 = scalar_lea.vmem [#allocation5], %s522_s9  ;;  %s936_s20 = scalar_lea.hbm %s990_s3, %s537_s7 }
  0x3e   : > { %v200_v21 = vrot.slane %v199_v18, 4  ;;  %v209_v22 = vrot.slane %v208_v19, 4  ;;  %s441_s17 = sshll.u32 %s189_s8, 4  ;;  %s427_s16 = scalar_lea.sflag [#allocation4], %s874_s5  ;;  %s938_s17 = int_to_ptr.vmem [resolvable:$true] %s441_s17 }
  0x3f   : > { %578 = vmatpush3.bf16.msra.mxu0 %v577_v8  ;;  %v388_v49 = vunpack.c.0.s8 %v387_v47  ;;  %s673_s9 = scalar_lea.vmem %s938_s17, 512  ;;  %p997_p10 = scmp.ne.s32.totalorder %s994_s24, 0 }
  0x40   : > { %579 = vmatprep.subr.bf16.mxu0 %v744_v0  ;;  %v201_v25 = vadd.f32 %v200_v21, %v199_v18  ;;  %v210_v26 = vadd.f32 %v209_v22, %v208_v19  ;;  %p674_p6 = scmp.ne.s32.totalorder %s938_s17, %s673_s9  ;;  %s748_s22 = smov [#allocation5]  }
  0x41   : > { %v391_v51 = vsub.s32 %v388_v49, %v390_v50  ;;  %s677_s26 = sshll.u32 %s748_s22, 4  ;;  %s678_s26 = int_to_ptr.vmem [resolvable:$false] %s677_s26 }
  0x42   : > { %v202_v28 = vrot.slane %v201_v25, 2  ;;  %v211_v29 = vrot.slane %v210_v26, 2  ;;  %p675_p11 = pnand %p674_p6, %p997_p10  ;;  %s679_s27 = scalar_lea.vmem %s678_s26, 1024 }
  0x43   : > { %581 = vmatpush3.bf16.msra.mxu0 %v580_v20  ;;  %p680_p8 = scmp.lt.s32.totalorder %s938_s17, %s678_s26  ;;  %p681_p9 = scmp.lt.s32.totalorder %s679_s27, %s673_s9 }
  0x44   : > { %582 = vmatprep.subr.bf16.mxu0 %v744_v0  ;;  %v203_v30 = vadd.f32 %v202_v28, %v201_v25  ;;  %v212_v31 = vadd.f32 %v211_v29, %v210_v26  ;;  %p676_p12 = pneg %p675_p11 }
  0x45   : > { %p682_p13 = por %p681_p9, %p680_p8 }
  0x46   : > { %v204_v32 = vrot.slane %v203_v30, 1  ;;  %v213_v33 = vrot.slane %v212_v31, 1 }
  0x47   : > { %584 = vmatpush3.bf16.msra.mxu0 %v583_v27  ;;  %p683_p1 = pnand %p682_p13, %p676_p12 }
  0x48   : > { %v205_v34 = vadd.f32 %v204_v32, %v203_v30  ;;  %v214_v35 = vadd.f32 %v213_v33, %v212_v31 }
  0x4a   : > { %v226_v36 = vsel %vm225_vm2, %v214_v35, %v205_v34 }
  0x4b   : > { %566 = vmatmul.mubr.msk.f32.vlgmr.msra.gmra.mrb[0].mxu0 %vm196_vm1, %v226_v36 }
 0x11e   : > { %v295_v38 = vpop.f32.mrb[0].mxu0 }
 0x11f   : > { %v299_v39 = vmax.f32 %v295_v38, 0.0  ;;  %v567_v40 = vpop.f32.mrb[1].mxu0 }
 0x121   : > { %571 = vmatmul.mubr.msk.f32.vlgmr.msra.gmra.mrb[0].mxu1 %vm301_vm4, %v299_v39 }
 0x1f4   : > { %v375_v41 = vpop.f32.mrb[0].mxu1 }
 0x1f5   : > { %v527_v42 = vmul.f32 -1.442695, %v375_v41  ;;  %v572_v43 = vpop.f32.mrb[1].mxu1 }
 0x1f7   : > { %639 = vpow2.f32 %v527_v42 }
 0x201   : > { %v640_v44 = vpop.eup %639 }
 0x202   : > { %v382_v45 = vadd.f32 1.0, %v640_v44 }
 0x204   : > { %641 = vrcp.f32 %v382_v45 }
 0x20e   : > { %v642_v52 = vpop.eup %641 }
 0x20f   : > { %v392_v53 = vrot.slane %v642_v52, %v391_v51 }
 0x211   : > { %v393_v55 = vcombine.high %v392_v53, %v392_v53  ;;  %v400_v56 = vrot.slane %v392_v53, %v391_v51 }
 0x213   : > { %v407_v57 = vrot.slane %v393_v55, %v391_v51  ;;  %v411_v58 = vrot.slane %v400_v56, %v410_v54 }
 0x215   : > { %v415_v59 = vrot.slane %v407_v57, %v410_v54  ;;  %v418_v60 = vmul.f32 %v411_v58, %v896_v7  ;;  %v419_v61 = vmul.f32 %v411_v58, %v898_v9 }
 0x217   : > { %v420_v62 = vmul.f32 %v415_v59, %v900_v10  ;;  %v421_v63 = vmul.f32 %v415_v59, %v902_v11  ;;  %422 = vst.msk [vmem:[%s189_s8] sm:$0xff] %vm196_vm1, %v418_v60  ;;  %423 = vst.msk [vmem:[%s189_s8 + $0x8] sm:$0xff] %vm196_vm1, %v419_v61 }
 0x219   : > { %424 = vst.msk [vmem:[%s189_s8 + $0x10] sm:$0xff] %vm196_vm1, %v420_v62  ;;  %425 = vst.msk [vmem:[%s189_s8 + $0x18] sm:$0xff] %vm196_vm1, %v421_v63 }
 0x21a   : > { %686 = shalt.err (!%p683_p1)
}
 0x21b   : > { %s687_s28 = scalar_lea.hbm %s936_s20, 512  ;;  %s691_s10 = scalar_lea.hbm %s990_s3, 2048 }
 0x21c   : > { %p688_p3 = scmp.ne.s32.totalorder %s936_s20, %s687_s28  ;;  %p692_p0 = scmp.lt.u32.totalorder %s936_s20, %s990_s3 }
 0x21d   : > { %p693_p2 = scmp.lt.u32.totalorder %s691_s10, %s687_s28  ;;  %p695_p6 = scmp.lt.u32.totalorder %s687_s28, %s936_s20 }
 0x21e   : > { %p689_p4 = pnand %p688_p3, %p997_p10 }
 0x21f   : > { %p694_p7 = por %p693_p2, %p692_p0 }
 0x220   : > { %p690_p5 = pneg %p689_p4 }
 0x221   : > { %p696_p11 = por %p695_p6, %p694_p7 }
 0x223   : > { %p697_p12 = pnand %p696_p11, %p690_p5 }
 0x225   : > { %700 = shalt.err (!%p697_p12)
}
 0x226   : > { %s749_s6 = smov 128   ;;  %s750_s7 = smov 8  }
 0x227   : > { %587 = dma.vmem_to_hbm [thread:$0]  (%p997_p10), %s938_s17, 512, %s936_s20, %s427_s16, %s749_s6, %s749_s6, %s750_s7  }
 0x228 PF: > { %p598_p8 = scmp.ge.s32.totalorder %s739_s15, 2  ;;  %s456_s8 = sand.u32 1, %s727_s12  }
 0x229   : > { %p998_p9 = scmp.ne.s32.totalorder %s995_s25, 0  ;;  %s457_s19 = scalar_lea.sflag [#allocation4], %s456_s8 }
 0x22b   : > { %p594_p13 = pnand %p598_p8, %p998_p9 }
 0x22d   : > { %722 = dma.done.wait (!%p594_p13), %s457_s19, 512  }
 0x22e   : > { %724 = vsyncadd (!%p594_p13), %s457_s19, 4294966784  ;;  %p16_p1 = scmp.ge.s32.totalorder %s796_s18, 6   ;;  %s999_s12 = smov %s731_s13 }
 0x22f   : > { %s1000_s13 = smov %s735_s14  ;;  %s1001_s14 = smov %s808_s21 }
 0x230   : > { %s1002_s15 = smov %s796_s18  ;;  %18 = sbr.rel (!%p16_p1) target bundleno = 5 (0x5), region = 77 }
 0x237   :  { %462 = vsyncpa [#allocation3], 1 }
 0x238   :  { %464 = vsyncpa [#allocation3 + $0x1], 1 }
 0x239   :  { %465 = vsyncpa [#allocation4], 1 }
 0x23a   :  { %467 = vsyncpa [#allocation4 + $0x1], 1 }

</bundles_post_ra>
